<compile_context>
chip_gen: v7x
topology: tpu7x:2x2x1
jax: 0.10.0
libtpu: 0.0.40
codegen_flags: <defaults>
</compile_context>

<pallas_src>
import functools

import jax
import jax.numpy as jnp
import numpy as np
from jax import lax
from jax.experimental import pallas as pl
from jax.experimental.pallas import tpu as pltpu


def _round_up(x, m):
    return ((x + m - 1) // m) * m


# ----------------------------------------------------------------------------
# Kernel 1: first-row-over-threshold for batch element 0 (row tiled).
# ----------------------------------------------------------------------------
def _find_start_kernel(x_ref, out_ref, first_ref, *, n_rows, row_tile,
                       threshold):
    i = pl.program_id(0)

    @pl.when(i == 0)
    def _():
        first_ref[...] = jnp.full((1, 1), n_rows, jnp.int32)

    x = x_ref[...].astype(jnp.float32)                       # (row_tile, D)
    sums = jnp.sum(x, axis=-1, keepdims=True)                # (row_tile, 1)
    row = lax.broadcasted_iota(jnp.int32, sums.shape, 0) + i * row_tile
    # Guard the (possibly garbage) tail rows of a partial edge block.
    over = (sums > jnp.float32(threshold)) & (row < n_rows)
    local_first = jnp.min(jnp.where(over, row, jnp.int32(n_rows)))
    first_ref[...] = jnp.minimum(first_ref[...], local_first)

    @pl.when(i == pl.num_programs(0) - 1)
    def _():
        f = first_ref[...]
        # no row over threshold -> fallback to L // 4 (matches the PyTorch ref)
        out_ref[...] = jnp.where(f < n_rows, f, jnp.int32(n_rows // 4))


def _pick_row_tile(n_rows, d, itemsize):
    budget = 4 * 1024 * 1024                       # bytes per input block
    max_rt = max(8, budget // max(1, d * itemsize))
    if n_rows <= max_rt:
        return n_rows
    # Prefer a multiple of 8 that divides n_rows (no partial edge block).
    rt = (max_rt // 8) * 8
    while rt >= 8 and n_rows % rt != 0:
        rt -= 8
    if rt >= 8:
        return rt
    return (max_rt // 8) * 8                       # guarded partial tail block


def _find_start(x, *, threshold):
    _, n_rows, d = x.shape
    row_tile = _pick_row_tile(n_rows, d, x.dtype.itemsize)
    out = pl.pallas_call(
        functools.partial(_find_start_kernel, n_rows=n_rows,
                          row_tile=row_tile, threshold=threshold),
        grid=(pl.cdiv(n_rows, row_tile),),
        in_specs=[pl.BlockSpec((None, row_tile, d), lambda i: (0, i, 0))],
        out_specs=pl.BlockSpec((1, 1), lambda i: (0, 0)),
        out_shape=jax.ShapeDtypeStruct((1, 1), jnp.int32),
        scratch_shapes=[pltpu.VMEM((1, 1), jnp.int32)],
        compiler_params=pltpu.CompilerParams(
            dimension_semantics=("arbitrary",),
            vmem_limit_bytes=32 * 1024 * 1024),
    )(x)
    return out[0, 0]


# ----------------------------------------------------------------------------
# Kernel 2: windowed, length-masked MSE via manual HBM window DMAs.
# ----------------------------------------------------------------------------
def _masked_mse_kernel(starts_ref, c_hbm, f_hbm, out_ref, c_buf, f_buf, sems,
                       *, tl, tlp, td):
    b = pl.program_id(0)
    di = pl.program_id(1)

    cs_dma = starts_ref[0]     # clamped coarse window start (in-bounds DMA)
    fs_dma = starts_ref[1]     # clamped fine window start
    c_off = starts_ref[2]      # coarse alignment offset inside the buffer
    f_off = starts_ref[3]      # fine alignment offset inside the buffer
    ml = starts_ref[4]         # common (clamped) window length

    col = di * td
    if td % 128 == 0:
        col = pl.multiple_of(col, 128)

    c_copy = pltpu.make_async_copy(
        c_hbm.at[b, pl.ds(cs_dma, tl), pl.ds(col, td)],
        c_buf.at[pl.ds(0, tl), :], sems.at[0])
    f_copy = pltpu.make_async_copy(
        f_hbm.at[b, pl.ds(fs_dma, tl), pl.ds(col, td)],
        f_buf.at[pl.ds(0, tl), :], sems.at[1])
    c_copy.start()
    f_copy.start()
    c_copy.wait()
    f_copy.wait()

    c = c_buf[pl.ds(c_off, tlp), :].astype(jnp.float32)
    f = f_buf[pl.ds(f_off, tlp), :].astype(jnp.float32)
    diff = c - f
    row = lax.broadcasted_iota(jnp.int32, diff.shape, 0)
    # Select semantics: rows >= ml (incl. stale buffer rows) contribute 0.
    sq = jnp.where(row < ml, diff * diff, jnp.float32(0.0))

    @pl.when(di == 0)
    def _():
        out_ref[...] = jnp.zeros_like(out_ref)

    out_ref[...] = out_ref[...] + jnp.sum(sq)


def _pick_feat_tile(d, tl, itemsize):
    if d % 128 != 0 or d <= 128:
        return d
    tlp = _round_up(tl, 8)
    budget = 12 * 1024 * 1024                      # both window buffers
    max_td = budget // max(1, 2 * 2 * tlp * itemsize)
    td = min(d, max(128, (max_td // 128) * 128))
    while d % td != 0:
        td -= 128
    return td


def _masked_mse(starts, coarse, fine, tl, ml):
    b, _, d = coarse.shape
    itemsize = max(coarse.dtype.itemsize, fine.dtype.itemsize)
    td = _pick_feat_tile(d, tl, itemsize)
    nd = d // td
    tlp = _round_up(tl, 8)
    buf_rows = 2 * tlp          # room for the in-buffer alignment offset slice

    partials = pl.pallas_call(
        functools.partial(_masked_mse_kernel, tl=tl, tlp=tlp, td=td),
        grid=(b, nd),
        in_specs=[
            pl.BlockSpec(memory_space=pltpu.MemorySpace.SMEM),  # starts
            pl.BlockSpec(memory_space=pl.ANY),                  # coarse (HBM)
            pl.BlockSpec(memory_space=pl.ANY),                  # fine (HBM)
        ],
        out_specs=pl.BlockSpec((1, 1), lambda bi, di: (bi, 0)),
        out_shape=jax.ShapeDtypeStruct((b, 1), jnp.float32),
        scratch_shapes=[
            pltpu.VMEM((buf_rows, td), coarse.dtype),
            pltpu.VMEM((buf_rows, td), fine.dtype),
            pltpu.SemaphoreType.DMA((2,)),
        ],
        compiler_params=pltpu.CompilerParams(
            dimension_semantics=("parallel", "arbitrary"),
            vmem_limit_bytes=32 * 1024 * 1024),
    )(starts, coarse, fine)

    denom = jnp.maximum(ml, 1).astype(jnp.float32) * jnp.float32(b * d)
    return jnp.sum(partials) / denom


# ----------------------------------------------------------------------------
# Kernel 3: plain MSE for the equal-length fast path (lane-dense, per-block
# partial sums, no in-kernel masking).
# ----------------------------------------------------------------------------
def _full_mse_kernel(a_ref, b_ref, out_ref):
    diff = a_ref[...].astype(jnp.float32) - b_ref[...].astype(jnp.float32)
    out_ref[...] = jnp.zeros_like(out_ref) + jnp.sum(diff * diff)


def _full_mse(a, b):
    total = a.size
    cols = 128
    rows = -(-total // cols)
    blk = rows if rows <= 2048 else 2048
    blk = max(8, _round_up(blk, 8))
    chunk = blk * cols
    padded = _round_up(total, chunk)

    af = a.reshape(-1)
    bf = b.reshape(-1)
    if padded != total:
        # Tail zero-pad: padded zeros contribute 0 to the squared-diff sum.
        af = jnp.pad(af, (0, padded - total))
        bf = jnp.pad(bf, (0, padded - total))
    a2 = af.reshape(-1, cols)
    b2 = bf.reshape(-1, cols)
    nblk = a2.shape[0] // blk

    parts = pl.pallas_call(
        _full_mse_kernel,
        grid=(nblk,),
        in_specs=[pl.BlockSpec((blk, cols), lambda i: (i, 0)),
                  pl.BlockSpec((blk, cols), lambda i: (i, 0))],
        out_specs=pl.BlockSpec((1, 1), lambda i: (i, 0)),
        out_shape=jax.ShapeDtypeStruct((nblk, 1), jnp.float32),
        compiler_params=pltpu.CompilerParams(
            dimension_semantics=("parallel",),
            vmem_limit_bytes=32 * 1024 * 1024),
    )(a2, b2)
    return jnp.sum(parts) / jnp.float32(total)


# ----------------------------------------------------------------------------
# Module forward (tiny scalar glue + kernels)
# ----------------------------------------------------------------------------
def smart_truncation_ddc(coarse_attention, fine_attention,
                         preserve_ratio=0.8, attention_threshold=0.1):
    B, Lc, D = coarse_attention.shape
    Bf, Lf, Df = fine_attention.shape
    assert B == Bf and D == Df

    if Lc == Lf:
        return _full_mse(coarse_attention, fine_attention)

    tl = int(min(Lc, Lf) * preserve_ratio)
    if tl <= 0:
        # PyTorch's F.mse_loss over an empty slice is NaN; keep the semantics.
        return jnp.float32(jnp.nan)

    cs = _find_start(coarse_attention, threshold=attention_threshold)
    fs = _find_start(fine_attention, threshold=attention_threshold)

    # Scalar bookkeeping (tiny XLA ops): the reference uses coarse rows
    # [cs, cs+ml) and fine rows [fs, fs+ml) with ml = min(tl, Lc-cs, Lf-fs).
    # DMA starts are clamped so a static tl-row copy is always in bounds; the
    # clamp offset is re-applied inside the kernel before the masked diff.
    valid_c = jnp.minimum(jnp.int32(tl), jnp.int32(Lc) - cs)
    valid_f = jnp.minimum(jnp.int32(tl), jnp.int32(Lf) - fs)
    ml = jnp.minimum(valid_c, valid_f)
    c_off = jnp.maximum(jnp.int32(0), cs - jnp.int32(Lc - tl))
    f_off = jnp.maximum(jnp.int32(0), fs - jnp.int32(Lf - tl))
    cs_dma = cs - c_off
    fs_dma = fs - f_off
    starts = jnp.stack([cs_dma, fs_dma, c_off, f_off, ml]).astype(jnp.int32)

    return _masked_mse(starts, coarse_attention, fine_attention, tl, ml)


# ----------------------------------------------------------------------------
# Pure-numpy reference mirroring the PyTorch module exactly
# ----------------------------------------------------------------------------
def _reference(coarse, fine, preserve_ratio=0.8, threshold=0.1):
    coarse = np.asarray(coarse, np.float32)
    fine = np.asarray(fine, np.float32)
    Lc, Lf = coarse.shape[1], fine.shape[1]
    if Lc == Lf:
        return np.mean((coarse - fine) ** 2)
    tl = int(min(Lc, Lf) * preserve_ratio)

    def find_start(x):
        s = x[0].sum(-1)
        m = s > threshold
        if m.any():
            return int(np.nonzero(m)[0][0])
        return x.shape[1] // 4

    cs, fs = find_start(coarse), find_start(fine)
    ci = coarse[:, cs:cs + tl, :]
    fi = fine[:, fs:fs + tl, :]
    ml = min(ci.shape[1], fi.shape[1])
    ci, fi = ci[:, :ml], fi[:, :ml]
    return np.mean((ci - fi) ** 2)


# ----------------------------------------------------------------------------
if __name__ == "__main__":
    key = jax.random.PRNGKey(0)
    k1, k2 = jax.random.split(key)

    B, D = 2, 32
    Lc, Lf = 12, 8   # unequal lengths -> smart-truncation path

    coarse = jax.random.uniform(k1, (B, Lc, D), jnp.float32)
    fine = jax.random.uniform(k2, (B, Lf, D), jnp.float32)
    # Make the leading rows "unimportant" so the region starts are nontrivial
    # (coarse_start=3, fine_start=4 -> fine window clamps and masks, exercising
    #  the clamped-DMA + alignment-offset path).
    coarse = coarse.at[:, :3, :].set(0.0)
    fine = fine.at[:, :4, :].set(0.0)

    loss = smart_truncation_ddc(coarse, fine)
    jax.block_until_ready(loss)
    np.testing.assert_allclose(np.asarray(loss), _reference(coarse, fine),
                               rtol=1e-5, atol=1e-6)

    # Equal-length fast path.
    loss_eq = smart_truncation_ddc(coarse[:, :Lf], fine)
    jax.block_until_ready(loss_eq)
    np.testing.assert_allclose(np.asarray(loss_eq),
                               _reference(coarse[:, :Lf], fine),
                               rtol=1e-5, atol=1e-6)

    print("KERNEL_OK")
</pallas_src>

<mosaic_0001>
module attributes {stable_mosaic.version = 11 : i64} {
  func.func @_find_start_kernel(%arg0: i32, %arg1: memref<1x12x32xf32, #tpu.memory_space<vmem>>, %arg2: memref<1x1xi32, #tpu.memory_space<vmem>>, %arg3: memref<1x1xi32, #tpu.memory_space<vmem>>) attributes {dimension_semantics = [#tpu.dimension_semantics<arbitrary>], iteration_bounds = array<i64: 1>, scalar_prefetch = 0 : i64, scratch_operands = 1 : i64, tpu.core_type = #tpu.core_type<tc>, window_params = [{transform_indices = @transform_0, window_bounds = array<i64: 1, 12, 32>}, {pipeline_mode = #tpu.pipeline_mode<synchronous>, transform_indices = @transform_1, window_bounds = array<i64: 1, 1>}]} {
    %c0_i32 = arith.constant 0 : i32
    %0 = arith.cmpi eq, %arg0, %c0_i32 : i32
    %1 = arith.extui %0 : i1 to i32
    %c0_i32_0 = arith.constant 0 : i32
    %2 = arith.cmpi ne, %1, %c0_i32_0 : i32
    scf.if %2 {
      %c12_i32_13 = arith.constant 12 : i32
      %29 = vector.broadcast %c12_i32_13 : i32 to vector<1x1xi32>
      %c0_14 = arith.constant 0 : index
      %c0_15 = arith.constant 0 : index
      %30 = vector.load %arg3[%c0_14, %c0_15] : memref<1x1xi32, #tpu.memory_space<vmem>>, vector<1x1xi32>
      tpu.vector_store %arg3[%c0_14, %c0_15], %29 {strides = array<i32>} : memref<1x1xi32, #tpu.memory_space<vmem>>, vector<1x1xi32>,
    } else {
    }
    %c0 = arith.constant 0 : index
    %c0_1 = arith.constant 0 : index
    %c0_2 = arith.constant 0 : index
    %3 = vector.load %arg1[%c0, %c0_1, %c0_2] : memref<1x12x32xf32, #tpu.memory_space<vmem>>, vector<1x12x32xf32>
    %4 = vector.shape_cast %3 : vector<1x12x32xf32> to vector<12x32xf32>
    %cst = arith.constant dense<0.000000e+00> : vector<12xf32>
    %5 = vector.multi_reduction <add>, %4, %cst [1] : vector<12x32xf32> to vector<12xf32>
    %6 = vector.shape_cast %5 : vector<12xf32> to vector<12x1xf32>
    %7 = tpu.iota {dimensions = array<i32: 0>} : vector<12x1xi32>
    %c12_i32 = arith.constant 12 : i32
    %8 = arith.muli %arg0, %c12_i32 : i32
    %9 = vector.broadcast %8 : i32 to vector<12x1xi32>
    %10 = arith.addi %7, %9 : vector<12x1xi32>
    %cst_3 = arith.constant 1.000000e-01 : f32
    %11 = vector.broadcast %cst_3 : f32 to vector<12x1xf32>
    %12 = arith.cmpf ogt, %6, %11 : vector<12x1xf32>
    %c12_i32_4 = arith.constant 12 : i32
    %13 = vector.broadcast %c12_i32_4 : i32 to vector<12x1xi32>
    %14 = arith.cmpi slt, %10, %13 : vector<12x1xi32>
    %15 = arith.andi %12, %14 : vector<12x1xi1>
    %c12_i32_5 = arith.constant 12 : i32
    %16 = vector.broadcast %c12_i32_5 : i32 to vector<12x1xi32>
    %17 = arith.select %15, %10, %16 : vector<12x1xi1>, vector<12x1xi32>
    %18 = vector.shape_cast %17 : vector<12x1xi32> to vector<1x12x1xi32>
    %cst_6 = arith.constant dense<2147483647> : vector<1xi32>
    %19 = vector.multi_reduction <minsi>, %18, %cst_6 [1, 2] : vector<1x12x1xi32> to vector<1xi32>
    %20 = vector.shape_cast %19 : vector<1xi32> to vector<1x1x1xi32>
    %21 = vector.extract %20[0, 0, 0] : i32 from vector<1x1x1xi32>
    %c0_7 = arith.constant 0 : index
    %c0_8 = arith.constant 0 : index
    %22 = vector.load %arg3[%c0_7, %c0_8] : memref<1x1xi32, #tpu.memory_space<vmem>>, vector<1x1xi32>
    %23 = vector.broadcast %21 : i32 to vector<1x1xi32>
    %24 = arith.minsi %22, %23 : vector<1x1xi32>
    %c0_9 = arith.constant 0 : index
    %c0_10 = arith.constant 0 : index
    %25 = vector.load %arg3[%c0_9, %c0_10] : memref<1x1xi32, #tpu.memory_space<vmem>>, vector<1x1xi32>
    tpu.vector_store %arg3[%c0_9, %c0_10], %24 {strides = array<i32>} : memref<1x1xi32, #tpu.memory_space<vmem>>, vector<1x1xi32>,
    %c0_i32_11 = arith.constant 0 : i32
    %26 = arith.cmpi eq, %arg0, %c0_i32_11 : i32
    %27 = arith.extui %26 : i1 to i32
    %c0_i32_12 = arith.constant 0 : i32
    %28 = arith.cmpi ne, %27, %c0_i32_12 : i32
    scf.if %28 {
      %c0_13 = arith.constant 0 : index
      %c0_14 = arith.constant 0 : index
      %29 = vector.load %arg3[%c0_13, %c0_14] : memref<1x1xi32, #tpu.memory_space<vmem>>, vector<1x1xi32>
      %c12_i32_15 = arith.constant 12 : i32
      %30 = vector.broadcast %c12_i32_15 : i32 to vector<1x1xi32>
      %31 = arith.cmpi slt, %29, %30 : vector<1x1xi32>
      %c3_i32 = arith.constant 3 : i32
      %32 = vector.broadcast %c3_i32 : i32 to vector<1x1xi32>
      %33 = arith.select %31, %29, %32 : vector<1x1xi1>, vector<1x1xi32>
      %c0_16 = arith.constant 0 : index
      %c0_17 = arith.constant 0 : index
      %34 = vector.load %arg2[%c0_16, %c0_17] : memref<1x1xi32, #tpu.memory_space<vmem>>, vector<1x1xi32>
      tpu.vector_store %arg2[%c0_16, %c0_17], %33 {strides = array<i32>} : memref<1x1xi32, #tpu.memory_space<vmem>>, vector<1x1xi32>,
    } else {
    }
    return
  }
  func.func @transform_0(%arg0: i32) -> (i32, i32, i32) {
    %c0_i32 = arith.constant 0 : i32
    %c0_i32_0 = arith.constant 0 : i32
    %c0_i32_1 = arith.constant 0 : i32
    return %c0_i32, %arg0, %c0_i32_0 : i32, i32, i32
  }
  func.func @transform_1(%arg0: i32) -> (i32, i32) {
    %c0_i32 = arith.constant 0 : i32
    %c0_i32_0 = arith.constant 0 : i32
    %c0_i32_1 = arith.constant 0 : i32
    return %c0_i32, %c0_i32_0 : i32, i32
  }
}

</mosaic_0001>

<bundles_post_ra>
// kernel: tpu_custom_call.1
= control target key start
LH: loop header
LB: loop body
LE: loop exit
PB: predicated region body
PF: predicated region fallthrough
CT: control target
= control target key end

     0   :  { %vm21_vm0 = vcmask 257024   ;;  %vm17_vm1 = vcmask 261120   ;;  %s142_s0 = inlined_call_operand.vmem [shape: f32[2,12,32], index: 0, kind: input, shape index: {}]   ;;  %s143_s1 = inlined_call_operand.hbm [shape: s32[1,1], index: 1, kind: output, shape index: {}]  }
   0x1   :  { %v16_v0 = vld [vmem:[%s142_s0 + $0x8] sm:$0xf]  ;;  %v15_v1 = vld [vmem:[%s142_s0] sm:$0xff] }
   0x2   :  { %v22_v2 = vsel %vm21_vm0, %v16_v0, 0.0 }
   0x3   :  { %6 = vsyncpa [#allocation4], 0  ;;  %23 = vadd.xlane.f32.xlu0 %v22_v2  ;;  %v18_v3 = vsel %vm17_vm1, %v15_v1, 0.0  ;;  %vm13_vm2 = vcmask 0   ;;  %v109_v4 = vmov 12   ;;  %v25_v5 = vlaneseq  ;;  %s110_s10 = smov [#allocation3]  }
   0x4   :  { %14 = vst.msk [vmem:[#allocation2] sm:$0x1] %vm13_vm2, %v109_v4  ;;  %vm40_vm6 = vcmask 1043456   ;;  %s73_s11 = sshll.u32 %s110_s10, 4  ;;  %s74_s11 = int_to_ptr.vmem [resolvable:$true] %s73_s11 }
   0x5   :  { %v26_v6 = vshrl.u32 %v25_v5, 7  ;;  %s85_s12 = scalar_lea.vmem %s74_s11, 16  ;;  %s89_s13 = scalar_lea.vmem %s74_s11, 32 }
   0x6   :  { %p86_p0 = scmp.ne.s32.totalorder %s74_s11, %s85_s12  ;;  %p90_p1 = scmp.lt.s32.totalorder %s74_s11, %s74_s11 }
   0x7   :  { %19 = vadd.xlane.f32.xlu0 %v18_v3  ;;  %v27_v7 = vadd.s32 8, %v26_v6  ;;  %p91_p2 = scmp.lt.s32.totalorder %s89_s13, %s85_s12 }
   0x9   :  { %vm35_vm3 = vcmp.lt.s32.totalorder %v27_v7, 12  ;;  %p92_p3 = por %p91_p2, %p90_p1 }
   0xb   :  { %v54_v20 = vld [vmem:[#allocation2] sm:$0x1]  ;;  %p93_p4 = pnand %p92_p3, %p86_p0 }
  0x90   :  { %v24_v8 = vpop.xlane.xlu0 %23 }
  0x91   :  { %vm33_vm4 = vcmp.gt.f32.partialorder %v24_v8, 0.1 }
  0x92   :  { %vm37_vm5 = vmand %vm33_vm4, %vm35_vm3 }
  0x93   :  { %v39_v9 = vsel %vm37_vm5, %v27_v7, 12 }
  0x94   :  { %v20_v10 = vpop.xlane.xlu0 %19  ;;  %v41_v11 = vsel %vm40_vm6, %v39_v9, 2147483647 }
  0x95   :  { %vm32_vm7 = vcmp.gt.f32.partialorder %v20_v10, 0.1 }
  0x96   :  { %v38_v12 = vsel %vm32_vm7, %v26_v6, 12 }
  0x97   :  { %vm42_vm8 = vcmp.lt.s32.totalorder %v38_v12, %v41_v11 }
  0x98   :  { %v43_v13 = vsel %vm42_vm8, %v38_v12, %v41_v11 }
  0x99   :  { %v44_v14 = vrot.slane %v43_v13, 4 }
  0x9b   :  { %vm45_vm9 = vcmp.lt.s32.totalorder %v43_v13, %v44_v14 }
  0x9c   :  { %v46_v15 = vsel %vm45_vm9, %v43_v13, %v44_v14 }
  0x9d   :  { %v47_v16 = vrot.slane %v46_v15, 2 }
  0x9f   :  { %vm48_vm10 = vcmp.lt.s32.totalorder %v46_v15, %v47_v16 }
  0xa0   :  { %v49_v17 = vsel %vm48_vm10, %v46_v15, %v47_v16 }
  0xa1   :  { %v50_v18 = vrot.slane %v49_v17, 1 }
  0xa3   :  { %vm51_vm11 = vcmp.lt.s32.totalorder %v49_v17, %v50_v18 }
  0xa4   :  { %v52_v19 = vsel %vm51_vm11, %v49_v17, %v50_v18 }
  0xa5   :  { %81 = vpush %v52_v19 }
  0xd6   :  { %s82_s0 = spop %81 }
  0xd7   :  { %v55_v21 = vstv %s82_s0 }
  0xd8   :  { %vm56_vm12 = vcmp.lt.s32.totalorder %v54_v20, %v55_v21 }
  0xd9   :  { %v57_v22 = vsel %vm56_vm12, %v54_v20, %v55_v21 }
  0xda   :  { %59 = vst.msk [vmem:[#allocation2] sm:$0x1] %vm13_vm2, %v57_v22 }
  0xe1   :  { %v63_v23 = vld [vmem:[#allocation2] sm:$0x1] }
  0xe2   :  { %vm64_vm13 = vcmp.lt.s32.totalorder %v63_v23, 12 }
  0xe3   :  { %v65_v24 = vsel %vm64_vm13, %v63_v23, 3 }
  0xe4   :  { %66 = vst.msk [vmem:[#allocation3] sm:$0x1] %vm13_vm2, %v65_v24 }
  0xe5   :  { %96 = shalt.err (!%p93_p4)
}
  0xe6   :  { %s97_s16 = scalar_lea.hbm %s143_s1, 16 }
  0xe7   :  { %p98_p5 = scmp.ne.s32.totalorder %s143_s1, %s97_s16  ;;  %p101_p6 = scmp.lt.u32.totalorder %s97_s16, %s143_s1 }
  0xe9   :  { %p103_p7 = pnand %p101_p6, %p98_p5 }
  0xeb   :  { %106 = shalt.err (!%p103_p7)
}
  0xec   :  { %76 = dma.vmem_to_hbm [thread:$0]  %s74_s11, 16, %s143_s1, [#allocation4]  }
  0xed   :  { %107 = dma.done.wait [#allocation4], 16  }
  0xee   :  { %108 = vsyncadd [#allocation4], 4294967280 }
  0xef   :  { %80 = vsyncpa [#allocation4], 1 }

</bundles_post_ra>
